<compile_context>
chip_gen: v5e
topology: v5e:2x2
jax: 0.10.0
libtpu: 0.0.40
codegen_flags: <defaults>
</compile_context>

<pallas_src>
import math
import functools

import jax
import jax.numpy as jnp
import numpy as np
from jax import lax
from jax.experimental import pallas as pl
from jax.experimental.pallas import tpu as pltpu

_EPS = 1e-12            # F.normalize default eps
_EPS_SQ = _EPS * _EPS

_DEFAULT_VMEM_BUDGET = 40 * 1024 * 1024   # fits v7x 64 MiB/TC with headroom


def _round_up(v, m):
    return ((v + m - 1) // m) * m


# ----------------------------- kernels --------------------------------------


def _prologue_kernel(x_ref, wl_ref, t_ref,
                     xn_ref, ctm_ref, ftl_ref, tnew_ref,
                     *, cos_m, sin_m, threshold, mm):
    """O(B*F) prologue: x L2-norm, target logit, margin terms and `t` update."""
    x = x_ref[...].astype(jnp.float32)                               # (B, F)
    x_n = x * lax.rsqrt(jnp.maximum(
        jnp.sum(x * x, axis=1, keepdims=True), _EPS_SQ))

    wl = wl_ref[...].astype(jnp.float32)                             # (B, F): row b = W[:, label[b]]
    inv_wl = lax.rsqrt(jnp.maximum(
        jnp.sum(wl * wl, axis=1, keepdims=True), _EPS_SQ))
    target = jnp.sum(x_n * wl, axis=1, keepdims=True) * inv_wl       # (B, 1)
    target = jnp.clip(target, -1.0, 1.0)

    sin_theta = jnp.sqrt(jnp.maximum(1.0 - target * target, 0.0))
    ctm = target * cos_m - sin_theta * sin_m                         # cos(theta + m)
    ftl = jnp.where(target > threshold, ctm, target - mm)            # final_target_logit

    t_new = jnp.mean(target) * 0.01 + 0.99 * t_ref[0, 0]

    xn_ref[...] = x_n.astype(xn_ref.dtype)                           # MXU operand dtype
    ctm_ref[...] = ctm
    ftl_ref[...] = ftl
    tnew_ref[...] = jnp.full((1, 1), t_new, dtype=jnp.float32)


def _main_kernel(xn_ref, w_ref, lbl_ref, ctm_ref, ftl_ref, t_ref, out_ref, *, s):
    """One (TB, TN) output tile: MXU matmul + result-scaled col-norm + fused epilogue."""
    j = pl.program_id(1)
    tn = out_ref.shape[-1]

    w = w_ref[...]                                                   # (F, TN) matmul dtype
    # f32-accumulated column sum-of-squares on the native tile, as one fused
    # convert+square+reduce expression (no persistent f32 copy of the tile).
    inv_wn = lax.rsqrt(jnp.maximum(
        jnp.sum(jnp.square(w.astype(jnp.float32)), axis=0, keepdims=True),
        _EPS_SQ))                                                    # (1, TN)

    cos = jnp.dot(xn_ref[...], w, preferred_element_type=jnp.float32) * inv_wn
    cos = jnp.clip(cos, -1.0, 1.0)

    # Cheap one-hot: per-row local label vs a (1, TN) iota, broadcast compare.
    local_lbl = lbl_ref[...] - j * tn                                # (TB, 1) int32
    col = lax.broadcasted_iota(jnp.int32, (1, tn), 1)                # (1, TN)
    onehot = local_lbl == col                                        # (TB, TN)

    ctm = ctm_ref[...]                                               # (TB, 1)
    ftl = ftl_ref[...]                                               # (TB, 1)
    t_new = t_ref[0, 0]                                              # scalar (SMEM)

    hard = cos * (t_new + cos)
    out = jnp.where(onehot, ftl, jnp.where(cos > ctm, hard, cos)) * s
    out_ref[...] = out.astype(out_ref.dtype)


def _cos_only_kernel(xn_ref, w_ref, out_ref):
    """label=None branch: cos = clamp(x_n @ normalize(W, dim=0), -1, 1); x_n pre-normalized."""
    w = w_ref[...]
    inv_wn = lax.rsqrt(jnp.maximum(
        jnp.sum(jnp.square(w.astype(jnp.float32)), axis=0, keepdims=True),
        _EPS_SQ))
    cos = jnp.dot(xn_ref[...], w, preferred_element_type=jnp.float32) * inv_wn
    out_ref[...] = jnp.clip(cos, -1.0, 1.0).astype(out_ref.dtype)


# ----------------------------- tiling ----------------------------------------


def _choose_tiles(B, F, C, w_bytes, mm_bytes, out_bytes, block_c, block_b, budget):
    """Pick (TB, TN) so double-buffered W / out tiles + temps fit the VMEM budget."""
    tn_cap = min(_round_up(int(block_c), 128), _round_up(C, 128))

    def vmem_use(tb, tn):
        return (2 * F * tn * w_bytes            # double-buffered W tiles
                + 2 * tb * tn * out_bytes       # double-buffered output tiles
                + 3 * tb * tn * 4               # f32 cos + epilogue temporaries
                + 2 * tb * F * mm_bytes         # resident normalized x
                + 2 * F * 4 + 8 * tb * 4)       # col-norm row + per-row vectors

    if block_b is None:
        tb = B
    else:
        tb = max(8, min(_round_up(int(block_b), 8), B))
        if tb != B and tb % 8 != 0:
            tb = B

    # Shrink the class tile first, then the batch tile, until the budget fits.
    tn = tn_cap
    while tn > 128 and vmem_use(tb, tn) > budget:
        tn -= 128
    while tb > 8 and tb % 16 == 0 and vmem_use(tb, tn) > budget:
        tb //= 2
    return tb, tn, vmem_use(tb, tn)


# ----------------------------- wrapper ---------------------------------------


def curricular_face_forward(x, weight, label=None, t=None, *,
                            s=64.0, m=0.5, block_c=4096, block_b=None,
                            matmul_dtype=None, out_dtype=None,
                            vmem_budget=_DEFAULT_VMEM_BUDGET):
    """JAX/Pallas equivalent of CurricularFace.forward.

    Returns (logits, t_new) when label is given; returns cos_theta when label is None.
    `matmul_dtype` defaults to weight.dtype (bf16 weights stay bf16 on the MXU; pass
    jnp.bfloat16 explicitly for the bf16-MXU path with f32 weights, e.g. on v5e).
    `out_dtype` defaults to x.dtype (bf16 inputs -> bf16 logits write).
    """
    B, F = x.shape
    F2, C = weight.shape
    assert F == F2, "in_features mismatch"

    if matmul_dtype is None:
        matmul_dtype = weight.dtype          # keep bf16 weights bf16 on the MXU
    matmul_dtype = jnp.dtype(matmul_dtype)
    if out_dtype is None:
        out_dtype = x.dtype
    out_dtype = jnp.dtype(out_dtype)

    # Cast W once, outside the hot loop, so the per-tile DMA streams the MXU dtype.
    w_mm = weight if weight.dtype == matmul_dtype else weight.astype(matmul_dtype)

    tb, tn, vmem_need = _choose_tiles(
        B, F, C, matmul_dtype.itemsize, matmul_dtype.itemsize, out_dtype.itemsize,
        block_c, block_b, vmem_budget)
    nb = pl.cdiv(B, tb)
    nc = pl.cdiv(C, tn)

    vmem_limit = int(min(max(vmem_need * 1.25 + (1 << 20), 32 * 1024 * 1024),
                         60 * 1024 * 1024))
    cparams = pltpu.CompilerParams(
        dimension_semantics=("parallel", "parallel"),
        vmem_limit_bytes=vmem_limit)

    if label is None:
        # Hoist the O(B*F) x-normalization out of the per-tile body (plain XLA).
        x32 = x.astype(jnp.float32)
        x_n = (x32 * lax.rsqrt(jnp.maximum(
            jnp.sum(x32 * x32, axis=1, keepdims=True), _EPS_SQ))).astype(matmul_dtype)
        cos = pl.pallas_call(
            _cos_only_kernel,
            grid=(nb, nc),
            out_shape=jax.ShapeDtypeStruct((B, C), out_dtype),
            in_specs=[
                pl.BlockSpec((tb, F), lambda i, j: (i, 0)),   # x_n resident across C tiles
                pl.BlockSpec((F, tn), lambda i, j: (0, j)),   # W tile, pipelined DMA
            ],
            out_specs=pl.BlockSpec((tb, tn), lambda i, j: (i, j)),
            compiler_params=cparams,
        )(x_n, w_mm)
        return cos

    label = label.reshape(B).astype(jnp.int32)
    if t is None:
        t = jnp.zeros((1,), jnp.float32)
    t = jnp.asarray(t, jnp.float32).reshape(1, 1)

    # Gather the B label columns of W (O(B*F), negligible vs the O(B*F*C) main pass).
    # TODO(synk): fold into the prologue via a scalar-prefetch DMA column gather.
    w_lbl = jnp.take(weight, label, axis=1).T                # (B, F)

    prologue = functools.partial(
        _prologue_kernel,
        cos_m=math.cos(m), sin_m=math.sin(m),
        threshold=math.cos(math.pi - m), mm=math.sin(math.pi - m) * m)

    x_n, ctm, ftl, t_new = pl.pallas_call(
        prologue,
        grid=(1,),
        out_shape=(
            jax.ShapeDtypeStruct((B, F), matmul_dtype),      # normalized x, MXU dtype
            jax.ShapeDtypeStruct((B, 1), jnp.float32),       # cos_theta_m
            jax.ShapeDtypeStruct((B, 1), jnp.float32),       # final_target_logit
            jax.ShapeDtypeStruct((1, 1), jnp.float32),       # t_new
        ),
        in_specs=[
            pl.BlockSpec((B, F), lambda i: (0, 0)),
            pl.BlockSpec((B, F), lambda i: (0, 0)),
            pl.BlockSpec(memory_space=pltpu.MemorySpace.SMEM),   # t scalar
        ],
        out_specs=(
            pl.BlockSpec((B, F), lambda i: (0, 0)),
            pl.BlockSpec((B, 1), lambda i: (0, 0)),
            pl.BlockSpec((B, 1), lambda i: (0, 0)),
            pl.BlockSpec((1, 1), lambda i: (0, 0)),
        ),
    )(x, w_lbl, t)

    logits = pl.pallas_call(
        functools.partial(_main_kernel, s=float(s)),
        grid=(nb, nc),
        out_shape=jax.ShapeDtypeStruct((B, C), out_dtype),   # exact shape: no pad, no slice
        in_specs=[
            pl.BlockSpec((tb, F), lambda i, j: (i, 0)),      # x_n resident across C tiles
            pl.BlockSpec((F, tn), lambda i, j: (0, j)),      # W tile, pipelined DMA
            pl.BlockSpec((tb, 1), lambda i, j: (i, 0)),      # label
            pl.BlockSpec((tb, 1), lambda i, j: (i, 0)),      # cos_theta_m
            pl.BlockSpec((tb, 1), lambda i, j: (i, 0)),      # final_target_logit
            pl.BlockSpec(memory_space=pltpu.MemorySpace.SMEM),   # t_new scalar
        ],
        out_specs=pl.BlockSpec((tb, tn), lambda i, j: (i, j)),
        compiler_params=cparams,
    )(x_n, w_mm, label.reshape(B, 1), ctm, ftl, t_new)

    return logits, t_new.reshape(())


# ----------------------------- reference (pure JAX) --------------------------


def _reference_forward(x, weight, label, t, *, s=64.0, m=0.5):
    cos_m, sin_m = math.cos(m), math.sin(m)
    threshold = math.cos(math.pi - m)
    mm = math.sin(math.pi - m) * m
    x = x.astype(jnp.float32)
    weight = weight.astype(jnp.float32)
    x_n = x / jnp.maximum(jnp.linalg.norm(x, axis=1, keepdims=True), _EPS)
    w_n = weight / jnp.maximum(jnp.linalg.norm(weight, axis=0, keepdims=True), _EPS)
    cos = jnp.clip(jnp.dot(x_n, w_n, precision=jax.lax.Precision.HIGHEST), -1.0, 1.0)
    B = x.shape[0]
    target = cos[jnp.arange(B), label][:, None]
    sin_theta = jnp.sqrt(jnp.maximum(1.0 - target ** 2, 0.0))
    ctm = target * cos_m - sin_theta * sin_m
    mask = cos > ctm
    ftl = jnp.where(target > threshold, ctm, target - mm)
    t_new = jnp.mean(target) * 0.01 + 0.99 * t
    cos_hard = jnp.where(mask, cos * (t_new + cos), cos)
    onehot = jax.nn.one_hot(label, cos.shape[1], dtype=bool)
    out = jnp.where(onehot, jnp.broadcast_to(ftl, cos.shape), cos_hard) * s
    return out, t_new, cos, ctm


# ----------------------------- main -------------------------------------------


if __name__ == "__main__":
    # Small deterministic shapes that still exercise C-tiling + the ragged last
    # block (C=1000 with TN=256): batch=8, in_features=128, classes=1000.
    B, F, C = 8, 128, 1000
    s_param, m_param = 64.0, 0.5

    key = jax.random.PRNGKey(0)
    kx, kw, kl = jax.random.split(key, 3)

    x = jax.random.normal(kx, (B, F), dtype=jnp.float32)
    weight = 0.01 * jax.random.normal(kw, (F, C), dtype=jnp.float32)   # nn.init.normal_(std=0.01)
    label = jax.random.randint(kl, (B,), 0, C, dtype=jnp.int32)
    t_buf = jnp.zeros((1,), jnp.float32)                               # registered buffer 't'

    logits, t_new = curricular_face_forward(
        x, weight, label, t_buf, s=s_param, m=m_param, block_c=256)
    logits = jax.block_until_ready(logits)
    t_new = jax.block_until_ready(t_new)

    # label=None path (pure cosine similarity), ragged last tile as well.
    cos_only = jax.block_until_ready(
        curricular_face_forward(x, weight, None, block_c=256))

    # Correctness vs pure-JAX reference.
    ref_logits, ref_t, ref_cos, ref_ctm = _reference_forward(
        x, weight, label, t_buf[0], s=s_param, m=m_param)

    np.testing.assert_allclose(np.asarray(cos_only), np.asarray(ref_cos),
                               rtol=1e-5, atol=1e-5)
    np.testing.assert_allclose(float(t_new), float(ref_t), rtol=1e-5, atol=1e-6)

    # Logits: exact up to f32 rounding, except elements sitting exactly on the
    # hard-example mask boundary (cos ~= cos_theta_m) where a 1-ulp difference
    # can legitimately flip the select.
    close = np.isclose(np.asarray(logits), np.asarray(ref_logits),
                       rtol=1e-4, atol=5e-4)
    near_boundary = np.abs(np.asarray(ref_cos) - np.asarray(ref_ctm)) < 1e-4
    assert np.all(close | near_boundary), "logits mismatch beyond mask-boundary tolerance"

    # bf16 weight path (bf16 MXU operands, bf16 DMA, bf16 logits write) — smoke test.
    logits_bf16, t_bf16 = curricular_face_forward(
        x.astype(jnp.bfloat16), weight.astype(jnp.bfloat16), label, t_buf,
        s=s_param, m=m_param, block_c=512)
    logits_bf16 = jax.block_until_ready(logits_bf16)
    assert logits_bf16.shape == (B, C)
    assert logits_bf16.dtype == jnp.bfloat16
    assert np.all(np.isfinite(np.asarray(logits_bf16.astype(jnp.float32))))

    print("KERNEL_OK")
</pallas_src>

<mosaic_0001>
module attributes {stable_mosaic.version = 11 : i64} {
  func.func @_prologue_kernel(%arg0: i32, %arg1: memref<8x128xf32, #tpu.memory_space<vmem>>, %arg2: memref<8x128xf32, #tpu.memory_space<vmem>>, %arg3: memref<1x1xf32, #tpu.memory_space<smem>>, %arg4: memref<8x128xf32, #tpu.memory_space<vmem>>, %arg5: memref<8x1xf32, #tpu.memory_space<vmem>>, %arg6: memref<8x1xf32, #tpu.memory_space<vmem>>, %arg7: memref<1x1xf32, #tpu.memory_space<vmem>>) attributes {dimension_semantics = [#tpu.dimension_semantics<arbitrary>], iteration_bounds = array<i64: 1>, scalar_prefetch = 0 : i64, scratch_operands = 0 : i64, tpu.core_type = #tpu.core_type<tc>, window_params = [{pipeline_mode = #tpu.pipeline_mode<synchronous>, transform_indices = @transform_0, window_bounds = array<i64: 8, 128>}, {pipeline_mode = #tpu.pipeline_mode<synchronous>, transform_indices = @transform_1, window_bounds = array<i64: 8, 128>}, {transform_indices = @transform_2, window_bounds = array<i64: 1, 1>}, {pipeline_mode = #tpu.pipeline_mode<synchronous>, transform_indices = @transform_3, window_bounds = array<i64: 8, 128>}, {pipeline_mode = #tpu.pipeline_mode<synchronous>, transform_indices = @transform_4, window_bounds = array<i64: 8, 1>}, {pipeline_mode = #tpu.pipeline_mode<synchronous>, transform_indices = @transform_5, window_bounds = array<i64: 8, 1>}, {pipeline_mode = #tpu.pipeline_mode<synchronous>, transform_indices = @transform_6, window_bounds = array<i64: 1, 1>}]} {
    %c0 = arith.constant 0 : index
    %c0_0 = arith.constant 0 : index
    %0 = vector.load %arg1[%c0, %c0_0] : memref<8x128xf32, #tpu.memory_space<vmem>>, vector<8x128xf32>
    %1 = arith.mulf %0, %0 : vector<8x128xf32>
    %cst = arith.constant dense<0.000000e+00> : vector<8xf32>
    %2 = vector.multi_reduction <add>, %1, %cst [1] : vector<8x128xf32> to vector<8xf32>
    %3 = vector.shape_cast %2 : vector<8xf32> to vector<8x1xf32>
    %cst_1 = arith.constant 1.000000e-24 : f32
    %4 = vector.broadcast %cst_1 : f32 to vector<8x1xf32>
    %5 = arith.maximumf %3, %4 : vector<8x1xf32>
    %6 = math.rsqrt %5 : vector<8x1xf32>
    %7 = vector.broadcast %6 : vector<8x1xf32> to vector<8x128xf32>
    %8 = arith.mulf %0, %7 : vector<8x128xf32>
    %c0_2 = arith.constant 0 : index
    %c0_3 = arith.constant 0 : index
    %9 = vector.load %arg2[%c0_2, %c0_3] : memref<8x128xf32, #tpu.memory_space<vmem>>, vector<8x128xf32>
    %10 = arith.mulf %9, %9 : vector<8x128xf32>
    %cst_4 = arith.constant dense<0.000000e+00> : vector<8xf32>
    %11 = vector.multi_reduction <add>, %10, %cst_4 [1] : vector<8x128xf32> to vector<8xf32>
    %12 = vector.shape_cast %11 : vector<8xf32> to vector<8x1xf32>
    %cst_5 = arith.constant 1.000000e-24 : f32
    %13 = vector.broadcast %cst_5 : f32 to vector<8x1xf32>
    %14 = arith.maximumf %12, %13 : vector<8x1xf32>
    %15 = math.rsqrt %14 : vector<8x1xf32>
    %16 = arith.mulf %8, %9 : vector<8x128xf32>
    %cst_6 = arith.constant dense<0.000000e+00> : vector<8xf32>
    %17 = vector.multi_reduction <add>, %16, %cst_6 [1] : vector<8x128xf32> to vector<8xf32>
    %18 = vector.shape_cast %17 : vector<8xf32> to vector<8x1xf32>
    %19 = arith.mulf %18, %15 : vector<8x1xf32>
    %cst_7 = arith.constant -1.000000e+00 : f32
    %cst_8 = arith.constant 1.000000e+00 : f32
    %20 = vector.broadcast %cst_7 : f32 to vector<8x1xf32>
    %21 = arith.maximumf %20, %19 : vector<8x1xf32>
    %22 = vector.broadcast %cst_8 : f32 to vector<8x1xf32>
    %23 = arith.minimumf %22, %21 : vector<8x1xf32>
    %24 = arith.mulf %23, %23 : vector<8x1xf32>
    %cst_9 = arith.constant 1.000000e+00 : f32
    %25 = vector.broadcast %cst_9 : f32 to vector<8x1xf32>
    %26 = arith.subf %25, %24 : vector<8x1xf32>
    %cst_10 = arith.constant 0.000000e+00 : f32
    %27 = vector.broadcast %cst_10 : f32 to vector<8x1xf32>
    %28 = arith.maximumf %26, %27 : vector<8x1xf32>
    %29 = math.sqrt %28 : vector<8x1xf32>
    %cst_11 = arith.constant 0.87758255 : f32
    %30 = vector.broadcast %cst_11 : f32 to vector<8x1xf32>
    %31 = arith.mulf %23, %30 : vector<8x1xf32>
    %cst_12 = arith.constant 0.47942555 : f32
    %32 = vector.broadcast %cst_12 : f32 to vector<8x1xf32>
    %33 = arith.mulf %29, %32 : vector<8x1xf32>
    %34 = arith.subf %31, %33 : vector<8x1xf32>
    %cst_13 = arith.constant -0.87758255 : f32
    %35 = vector.broadcast %cst_13 : f32 to vector<8x1xf32>
    %36 = arith.cmpf ogt, %23, %35 : vector<8x1xf32>
    %cst_14 = arith.constant 0.239712775 : f32
    %37 = vector.broadcast %cst_14 : f32 to vector<8x1xf32>
    %38 = arith.subf %23, %37 : vector<8x1xf32>
    %39 = arith.select %36, %34, %38 : vector<8x1xi1>, vector<8x1xf32>
    %40 = vector.shape_cast %23 : vector<8x1xf32> to vector<1x8x1xf32>
    %cst_15 = arith.constant dense<0.000000e+00> : vector<1xf32>
    %41 = vector.multi_reduction <add>, %40, %cst_15 [1, 2] : vector<1x8x1xf32> to vector<1xf32>
    %42 = vector.shape_cast %41 : vector<1xf32> to vector<1x1x1xf32>
    %43 = vector.extract %42[0, 0, 0] : f32 from vector<1x1x1xf32>
    %cst_16 = arith.constant 8.000000e+00 : f32
    %44 = arith.divf %43, %cst_16 : f32
    %cst_17 = arith.constant 0.00999999977 : f32
    %45 = arith.mulf %44, %cst_17 : f32
    %c0_18 = arith.constant 0 : index
    %c0_19 = arith.constant 0 : index
    %46 = memref.load %arg3[%c0_18, %c0_19] : memref<1x1xf32, #tpu.memory_space<smem>>
    %cst_20 = arith.constant 9.900000e-01 : f32
    %47 = arith.mulf %cst_20, %46 : f32
    %48 = arith.addf %45, %47 : f32
    %c0_21 = arith.constant 0 : index
    %c0_22 = arith.constant 0 : index
    %49 = vector.load %arg4[%c0_21, %c0_22] : memref<8x128xf32, #tpu.memory_space<vmem>>, vector<8x128xf32>
    tpu.vector_store %arg4[%c0_21, %c0_22], %8 {strides = array<i32>} : memref<8x128xf32, #tpu.memory_space<vmem>>, vector<8x128xf32>,
    %c0_23 = arith.constant 0 : index
    %c0_24 = arith.constant 0 : index
    %50 = vector.load %arg5[%c0_23, %c0_24] : memref<8x1xf32, #tpu.memory_space<vmem>>, vector<8x1xf32>
    tpu.vector_store %arg5[%c0_23, %c0_24], %34 {strides = array<i32>} : memref<8x1xf32, #tpu.memory_space<vmem>>, vector<8x1xf32>,
    %c0_25 = arith.constant 0 : index
    %c0_26 = arith.constant 0 : index
    %51 = vector.load %arg6[%c0_25, %c0_26] : memref<8x1xf32, #tpu.memory_space<vmem>>, vector<8x1xf32>
    tpu.vector_store %arg6[%c0_25, %c0_26], %39 {strides = array<i32>} : memref<8x1xf32, #tpu.memory_space<vmem>>, vector<8x1xf32>,
    %52 = vector.broadcast %48 : f32 to vector<1x1xf32>
    %c0_27 = arith.constant 0 : index
    %c0_28 = arith.constant 0 : index
    %53 = vector.load %arg7[%c0_27, %c0_28] : memref<1x1xf32, #tpu.memory_space<vmem>>, vector<1x1xf32>
    tpu.vector_store %arg7[%c0_27, %c0_28], %52 {strides = array<i32>} : memref<1x1xf32, #tpu.memory_space<vmem>>, vector<1x1xf32>,
    return
  }
  func.func @transform_0(%arg0: i32) -> (i32, i32) {
    %c0_i32 = arith.constant 0 : i32
    %c0_i32_0 = arith.constant 0 : i32
    %c0_i32_1 = arith.constant 0 : i32
    return %c0_i32, %c0_i32_0 : i32, i32
  }
  func.func @transform_1(%arg0: i32) -> (i32, i32) {
    %c0_i32 = arith.constant 0 : i32
    %c0_i32_0 = arith.constant 0 : i32
    %c0_i32_1 = arith.constant 0 : i32
    return %c0_i32, %c0_i32_0 : i32, i32
  }
  func.func @transform_2(%arg0: i32) -> (i32, i32) {
    %c0_i32 = arith.constant 0 : i32
    %c0_i32_0 = arith.constant 0 : i32
    %c0_i32_1 = arith.constant 0 : i32
    return %c0_i32, %c0_i32_0 : i32, i32
  }
  func.func @transform_3(%arg0: i32) -> (i32, i32) {
    %c0_i32 = arith.constant 0 : i32
    %c0_i32_0 = arith.constant 0 : i32
    %c0_i32_1 = arith.constant 0 : i32
    return %c0_i32, %c0_i32_0 : i32, i32
  }
  func.func @transform_4(%arg0: i32) -> (i32, i32) {
    %c0_i32 = arith.constant 0 : i32
    %c0_i32_0 = arith.constant 0 : i32
    %c0_i32_1 = arith.constant 0 : i32
    return %c0_i32, %c0_i32_0 : i32, i32
  }
  func.func @transform_5(%arg0: i32) -> (i32, i32) {
    %c0_i32 = arith.constant 0 : i32
    %c0_i32_0 = arith.constant 0 : i32
    %c0_i32_1 = arith.constant 0 : i32
    return %c0_i32, %c0_i32_0 : i32, i32
  }
  func.func @transform_6(%arg0: i32) -> (i32, i32) {
    %c0_i32 = arith.constant 0 : i32
    %c0_i32_0 = arith.constant 0 : i32
    %c0_i32_1 = arith.constant 0 : i32
    return %c0_i32, %c0_i32_0 : i32, i32
  }
}

</mosaic_0001>

<bundles_post_ra>
// kernel: tpu_custom_call.1
= control target key start
LH: loop header
LB: loop body
LE: loop exit
PB: predicated region body
PF: predicated region fallthrough
CT: control target
= control target key end

     0   :  { %13 = vsyncpa [#allocation4], 0  ;;  %s366_s0 = inlined_call_operand.hbm [shape: f32[8,128], index: 0, kind: input, shape index: {}]   ;;  %s367_s1 = inlined_call_operand.hbm [shape: f32[8,128], index: 1, kind: input, shape index: {}]   ;;  %s368_s2 = inlined_call_operand.<no memory space> [shape: f32[1,1], index: 2, kind: input, shape index: {}]   ;;  %s369_s3 = inlined_call_operand.hbm [shape: f32[8,128], index: 3, kind: output, shape index: {0}]   ;;  %s370_s4 = inlined_call_operand.vmem [shape: f32[8,1], index: 4, kind: output, shape index: {1}]   ;;  %s371_s5 = inlined_call_operand.vmem [shape: f32[8,1], index: 5, kind: output, shape index: {2}]   ;;  %s372_s6 = inlined_call_operand.hbm [shape: f32[1,1], index: 6, kind: output, shape index: {3}]  }
   0x1   :  { %14 = vsyncpa [#allocation7], 0 }
   0x2   :  { %15 = vsyncpa [#allocation5], 0 }
   0x3   :  { %16 = vsyncpa [#allocation10], 0  ;;  %s22_s23 = sshll.u32 %s366_s0, 4  ;;  %s302_s24 = smov [#allocation3]   ;;  %s23_s23 = int_to_ptr.hbm [resolvable:$true] %s22_s23 }
   0x4   :  { %s24_s25 = sshll.u32 %s302_s24, 4  ;;  %s33_s28 = sshll.u32 %s367_s1, 4  ;;  %s25_s25 = int_to_ptr.vmem [resolvable:$true] %s24_s25  ;;  %s34_s28 = int_to_ptr.hbm [resolvable:$true] %s33_s28 }
   0x5   :  { %27 = dma.hbm_to_vmem [thread:$0]  %s23_s23, 128, %s25_s25, [#allocation4]  }
   0x6   :  { %s303_s29 = smov [#allocation6]  }
   0x7   :  { %s35_s30 = sshll.u32 %s303_s29, 4  ;;  %s36_s30 = int_to_ptr.vmem [resolvable:$true] %s35_s30 }
   0x8   :  { %38 = dma.hbm_to_vmem [thread:$0]  %s34_s28, 128, %s36_s30, [#allocation7]  }
   0x9   :  { %294 = dma.done.wait [#allocation4], 128  }
   0xa   :  { %295 = vsyncadd [#allocation4], 4294967168 }
   0xb   :  { %296 = dma.done.wait [#allocation7], 128  }
   0xc   :  { %297 = vsyncadd [#allocation7], 4294967168  ;;  %v49_v0 = vld [vmem:[#allocation3] sm:$0xff]  ;;  %v65_v2 = vld [vmem:[#allocation6] sm:$0xff]  ;;  %vm107_vm6 = vcmask 7168   ;;  %s304_s9 = smov [#allocation8]  }
   0xd   :  { %v50_v1 = vmul.f32 %v49_v0, %v49_v0  ;;  %v66_v3 = vmul.f32 %v65_v2, %v65_v2  ;;  %s142_s10 = sshll.u32 %s304_s9, 4  ;;  %s144_s13 = sshll.u32 %s369_s3, 4  ;;  %v305_v46 = vmov 8.0   ;;  %vm135_vm11 = vcmask 0   ;;  %s143_s10 = int_to_ptr.vmem [resolvable:$true] %s142_s10  ;;  %s145_s13 = int_to_ptr.hbm [resolvable:$true] %s144_s13 }
   0xe   :  { %s129_s15 = smul.f32 0.99, %s368_s2  ;;  %s306_s17 = smov [#allocation9]  }
   0xf   :  { %51 = vadd.xlane.f32.xlu0 %v50_v1  ;;  %s157_s18 = sshll.u32 %s306_s17, 4  ;;  %s159_s22 = sshll.u32 %s372_s6, 4  ;;  %s158_s18 = int_to_ptr.vmem [resolvable:$true] %s157_s18  ;;  %s160_s22 = int_to_ptr.hbm [resolvable:$true] %s159_s22 }
  0x17   :  { %67 = vadd.xlane.f32.xlu0 %v66_v3 }
  0x82   :  { %v52_v4 = vpop.xlane.xlu0 %51 }
  0x83   :  { %v53_v5 = vmax.f32 %v52_v4, 1e-24 }
  0x85   :  { %190 = vrsqrt.f32 %v53_v5  ;;  %vm60_vm1 = vweird.f32 %v53_v5 }
  0x8a   :  { %v68_v15 = vpop.xlane.xlu0 %67 }
  0x8b   :  { %v191_v6 = vpop.eup %190  ;;  %v69_v16 = vmax.f32 %v68_v15, 1e-24 }
  0x8c   :  { %v55_v7 = vmul.f32 %v191_v6, %v53_v5  ;;  %vm61_vm0 = vweird.f32 %v191_v6 }
  0x8d   :  { %vm62_vm2 = vmor %vm60_vm1, %vm61_vm0  ;;  %192 = vrsqrt.f32 %v69_v16  ;;  %vm76_vm3 = vweird.f32 %v69_v16 }
  0x8e   :  { %v56_v8 = vmul.f32 %v191_v6, %v55_v7 }
  0x90   :  { %v57_v9 = vmul.f32 0.5, %v56_v8 }
  0x92   :  { %v58_v10 = vsub.f32 1.5, %v57_v9 }
  0x93   :  { %v193_v17 = vpop.eup %192 }
  0x94   :  { %v59_v11 = vmul.f32 %v191_v6, %v58_v10  ;;  %v71_v18 = vmul.f32 %v193_v17, %v69_v16  ;;  %vm77_vm4 = vweird.f32 %v193_v17 }
  0x95   :  { %vm78_vm5 = vmor %vm76_vm3, %vm77_vm4 }
  0x96   :  { %v63_v12 = vsel %vm62_vm2, %v191_v6, %v59_v11  ;;  %v72_v19 = vmul.f32 %v193_v17, %v71_v18 }
  0x97   :  { %v64_v13 = vmul.f32 %v63_v12, %v49_v0 }
  0x98   :  { %v73_v20 = vmul.f32 0.5, %v72_v19 }
  0x99   :  { %v80_v14 = vmul.f32 %v65_v2, %v64_v13  ;;  %131 = vst [vmem:[#allocation8] sm:$0xff] %v64_v13 }
  0x9a   :  { %v74_v21 = vsub.f32 1.5, %v73_v20  ;;  %147 = dma.vmem_to_hbm [thread:$0]  %s143_s10, 128, %s145_s13, [#allocation5]  }
  0x9b   :  { %81 = vadd.xlane.f32.xlu1 %v80_v14 }
  0x9c   :  { %v75_v22 = vmul.f32 %v193_v17, %v74_v21 }
  0x9e   :  { %v79_v24 = vsel %vm78_vm5, %v193_v17, %v75_v22 }
 0x10e   :  { %v82_v23 = vpop.xlane.xlu1 %81 }
 0x10f   :  { %v83_v25 = vmul.f32 %v82_v23, %v79_v24 }
 0x111   :  { %v179_v26 = vclamps-f32 %v83_v25, 1.0 }
 0x113   :  { %v86_v27 = vmul.f32 %v179_v26, %v179_v26  ;;  %v108_v28 = vsel %vm107_vm6, %v179_v26, 0.0  ;;  %v101_v41 = vmul.f32 0.87758255, %v179_v26  ;;  %v180_v44 = vadd.f32 -0.23971277, %v179_v26 }
 0x114   :  { %109 = vadd.xlane.f32.xlu1 %v108_v28  ;;  %vm104_vm9 = vcmp.gt.f32.partialorder %v179_v26, -0.87758255 }
 0x115   :  { %v87_v29 = vsub.f32 1.0, %v86_v27 }
 0x117   :  { %v88_v30 = vmax.f32 %v87_v29, 0.0 }
 0x119   :  { %194 = vrsqrt.f32 %v88_v30  ;;  %vm96_vm7 = vcmp.eq.f32.partialorder %v88_v30, inf  ;;  %v99_v38 = vand.u32 2147483648, %v88_v30  ;;  %vm98_vm8 = vcmp.eq.f32.partialorder %v88_v30, 0.0 }
 0x11a   :  { %196 = vrcp.f32 %v305_v46 }
 0x11f   :  { %v195_v31 = vpop.eup %194 }
 0x120   :  { %v90_v32 = vmul.f32 %v195_v31, %v88_v30  ;;  %v197_v47 = vpop.eup %196 }
 0x121   :  { %v119_v48 = vmul.f32 8.0, %v197_v47  ;;  %vm123_vm10 = vweird.f32 %v197_v47 }
 0x122   :  { %v91_v33 = vmul.f32 %v195_v31, %v90_v32 }
 0x123   :  { %v120_v49 = vsub.f32 1.0, %v119_v48 }
 0x124   :  { %v92_v34 = vmul.f32 0.5, %v91_v33 }
 0x125   :  { %v121_v53 = vmul.f32 %v197_v47, %v120_v49 }
 0x126   :  { %v93_v35 = vsub.f32 1.5, %v92_v34 }
 0x127   :  { %v122_v56 = vadd.f32 %v197_v47, %v121_v53 }
 0x128   :  { %v94_v36 = vmul.f32 %v195_v31, %v93_v35 }
 0x129   :  { %v124_v59 = vsel %vm123_vm10, %v197_v47, %v122_v56 }
 0x12a   :  { %v95_v37 = vmul.f32 %v94_v36, %v88_v30 }
 0x12c   :  { %v97_v39 = vsel %vm96_vm7, %v88_v30, %v95_v37 }
 0x12d   :  { %v100_v40 = vsel %vm98_vm8, %v99_v38, %v97_v39 }
 0x12e   :  { %v102_v42 = vmul.f32 0.47942555, %v100_v40 }
 0x130   :  { %v103_v43 = vsub.f32 %v101_v41, %v102_v42 }
 0x132   :  { %v106_v45 = vsel %vm104_vm9, %v103_v43, %v180_v44  ;;  %132 = vst.msk [vmem:[%s370_s4] sm:$0xff] %vm107_vm6, %v103_v43 }
 0x133   :  { %133 = vst.msk [vmem:[%s371_s5] sm:$0xff] %vm107_vm6, %v106_v45 }
 0x187   :  { %v110_v50 = vpop.xlane.xlu1 %109 }
 0x188   :  { %v111_v51 = vrot.slane %v110_v50, 4 }
 0x18a   :  { %v112_v52 = vadd.f32 %v111_v51, %v110_v50 }
 0x18c   :  { %v113_v54 = vrot.slane %v112_v52, 2 }
 0x18e   :  { %v114_v55 = vadd.f32 %v113_v54, %v112_v52 }
 0x190   :  { %v115_v57 = vrot.slane %v114_v55, 1 }
 0x192   :  { %v116_v58 = vadd.f32 %v115_v57, %v114_v55 }
 0x194   :  { %181 = vpush %v116_v58 }
 0x195   :  { %183 = vpush %v124_v59 }
 0x1c5   :  { %s182_s3 = spop %181 }
 0x1c6   :  { %s184_s4 = spop %183 }
 0x1c7   :  { %s126_s16 = smul.f32 %s184_s4, %s182_s3 }
 0x1c9   :  { %s127_s19 = smul.f32 0.01, %s126_s16 }
 0x1cb   :  { %s130_s23 = sadd.f32 %s129_s15, %s127_s19 }
 0x1cd   :  { %v134_v60 = vstv %s130_s23 }
 0x1ce   :  { %136 = vst.msk [vmem:[#allocation9] sm:$0x1] %vm135_vm11, %v134_v60 }
 0x1cf   :  { %162 = dma.vmem_to_hbm [thread:$0]  %s158_s18, 16, %s160_s22, [#allocation10]  }
 0x1d0   :  { %298 = dma.done.wait [#allocation5], 128  }
 0x1d1   :  { %299 = vsyncadd [#allocation5], 4294967168 }
 0x1d2   :  { %300 = dma.done.wait [#allocation10], 16  }
 0x1d3   :  { %301 = vsyncadd [#allocation10], 4294967280 }
 0x1d4   :  { %175 = vsyncpa [#allocation4], 1 }
 0x1d5   :  { %176 = vsyncpa [#allocation7], 1 }
 0x1d6   :  { %177 = vsyncpa [#allocation5], 1 }
 0x1d7   :  { %178 = vsyncpa [#allocation10], 1 }

</bundles_post_ra>
